<compile_context>
chip_gen: v7x
topology: tpu7x:2x2x1
jax: 0.10.0
libtpu: 0.0.40
codegen_flags: <defaults>
</compile_context>

<pallas_src>
import jax
import jax.numpy as jnp
from jax import lax
from jax.experimental import pallas as pl
from jax.experimental.pallas import tpu as pltpu

_N_LOGITS = 8  # 3 (age) + 2 (gender) + 3 (mask)


def _first_argmax(logits, n_cls):
    """torch.argmax(x, dim=1) semantics (index of FIRST max), keepdims."""
    m = jnp.max(logits, axis=-1, keepdims=True)
    ids = lax.broadcasted_iota(jnp.int32, logits.shape, 1)
    return jnp.min(jnp.where(logits >= m, ids, jnp.int32(n_cls)),
                   axis=-1, keepdims=True)


def _multimodel_kernel(x_ref, w_ref, b_ref, y_ref, acc_ref):
    # x_ref  : [TB, C, T_HW] input dtype — streamed tile of the image batch
    # w_ref  : [C, 8]  f32   — fused head weights (age | gender | mask)
    # b_ref  : [1, 8]  f32   — fused head bias, pre-scaled by H*W
    # y_ref  : [TB, 1] int32 — combined labels (written on the last HW tile)
    # acc_ref: [TB, C] f32   — running spatial sum (== pooled mean * HW)
    j = pl.program_id(1)

    @pl.when(j == 0)
    def _init():
        acc_ref[...] = jnp.zeros_like(acc_ref)

    # Cast per-tile (keeps HBM traffic at the input's native width) and
    # accumulate the spatial sum; the 1/HW factor is folded into the bias.
    x = x_ref[...].astype(jnp.float32)
    acc_ref[...] += jnp.sum(x, axis=-1)

    @pl.when(j == pl.num_programs(1) - 1)
    def _finalize():
        pooled = acc_ref[...]                                 # [TB, C]
        tb, c = pooled.shape                                  # static ints
        # Tiny head: C broadcast-multiply-adds on the VPU (keep off the MXU).
        logits = jnp.broadcast_to(b_ref[...], (tb, _N_LOGITS))
        for ci in range(c):
            logits = logits + pooled[:, ci:ci + 1] * w_ref[ci:ci + 1, :]

        age = _first_argmax(logits[:, 0:3], 3)                # [TB, 1]
        gender = _first_argmax(logits[:, 3:5], 2)             # [TB, 1]
        mask = _first_argmax(logits[:, 5:8], 3)               # [TB, 1]
        y_ref[...] = age + gender * 3 + mask * 6


def _pick_tile(n, candidates):
    for c in candidates:
        if n % c == 0:
            return c
    return n


def multimodel_forward(x_nchw, w, b):
    """x_nchw: [B, C, H, W] (native float dtype), w: [C, 8], b: [8]."""
    B, C, H, W = x_nchw.shape
    HW = H * W
    # Free contiguous reshape — no HBM copy, no dtype change in the wrapper.
    x3 = x_nchw.reshape(B, C, HW)

    # Fold the average-pool's 1/HW into the bias: sum-pool + HW*b has the same
    # per-head argmax as mean-pool + b (common positive scale).
    w2 = w.astype(jnp.float32)
    b2 = (b.astype(jnp.float32) * float(HW)).reshape(1, _N_LOGITS)

    # Tile selection.  Output block (TB, 1) needs TB % 8 == 0 or TB == B.
    TB = _pick_tile(B, (128, 64, 32, 16, 8))
    # Lane tile: large multiples of 128 keep the streaming DMA near the HBM
    # roofline; cap the double-buffered footprint for v7x's smaller VMEM.
    T_HW = _pick_tile(HW, (2048, 1024, 512, 256, 128))
    itemsize = jnp.dtype(x3.dtype).itemsize
    while 2 * TB * C * T_HW * itemsize > 8 * 1024 * 1024 and T_HW % 256 == 0:
        T_HW //= 2

    grid = (B // TB, HW // T_HW)

    cost = pl.CostEstimate(
        flops=2 * B * C * HW + 2 * B * C * _N_LOGITS,
        bytes_accessed=B * C * HW * itemsize + (C + 1) * _N_LOGITS * 4 + B * 4,
        transcendentals=0,
    )

    y = pl.pallas_call(
        _multimodel_kernel,
        out_shape=jax.ShapeDtypeStruct((B, 1), jnp.int32),
        grid_spec=pltpu.PrefetchScalarGridSpec(
            num_scalar_prefetch=0,
            grid=grid,
            in_specs=[
                pl.BlockSpec((TB, C, T_HW), lambda i, j: (i, 0, j)),
                pl.BlockSpec((C, _N_LOGITS), lambda i, j: (0, 0)),
                pl.BlockSpec((1, _N_LOGITS), lambda i, j: (0, 0)),
            ],
            out_specs=pl.BlockSpec((TB, 1), lambda i, j: (i, 0)),
            scratch_shapes=[pltpu.VMEM((TB, C), jnp.float32)],
        ),
        compiler_params=pltpu.CompilerParams(
            dimension_semantics=("parallel", "arbitrary"),
            vmem_limit_bytes=32 * 1024 * 1024,
        ),
        cost_estimate=cost,
    )(x3, w2, b2)
    # Original forward() returns a 1-D array of class indices.
    return y[:, 0]


def init_params(key, C):
    """Deterministic parameter init (stand-in for the three checkpoints)."""
    k_w, k_b, k_cw, k_cb = jax.random.split(key, 4)
    # fused heads: age (C,3) | gender (C,2) | mask (C,3)  -> [C, 8]
    w = jax.random.normal(k_w, (C, _N_LOGITS), jnp.float32) * 0.1
    b = jax.random.normal(k_b, (_N_LOGITS,), jnp.float32) * 0.1
    # self.classifier = nn.Linear(8, 18) exists in __init__ but is unused in
    # forward(); initialized here for shape fidelity only.
    cls_w = jax.random.normal(k_cw, (_N_LOGITS, 18), jnp.float32) * 0.1
    cls_b = jnp.zeros((18,), jnp.float32)
    return w, b, cls_w, cls_b


if __name__ == "__main__":
    key = jax.random.PRNGKey(0)

    def run_and_check(B, C, H, W, k):
        k_x, k_p = jax.random.split(k)
        x = jax.random.normal(k_x, (B, C, H, W), jnp.float32)
        w, b, _cls_w, _cls_b = init_params(k_p, C)

        y = jax.block_until_ready(multimodel_forward(x, w, b))

        # Pure-JAX reference: mean-pool + fused heads + first-argmax combine.
        pooled = jnp.mean(x.reshape(B, C, H * W), axis=-1)
        logits = pooled @ w + b
        y_ref = (jnp.argmax(logits[:, 0:3], axis=1)
                 + jnp.argmax(logits[:, 3:5], axis=1) * 3
                 + jnp.argmax(logits[:, 5:8], axis=1) * 6)

        assert y.shape == (B,)
        assert bool(jnp.all((y >= 0) & (y < 18)))
        assert bool(jnp.all(y == y_ref.astype(jnp.int32)))

    k1, k2 = jax.random.split(key)
    # spec-consistent toy shape (single-tile grid)
    run_and_check(2, 4, 16, 16, k1)
    # slightly larger shape exercising the multi-HW-tile accumulation path
    run_and_check(8, 4, 64, 64, k2)
    print("KERNEL_OK")
</pallas_src>

<mosaic_0001>
module attributes {stable_mosaic.version = 11 : i64} {
  func.func @_multimodel_kernel(%arg0: i32, %arg1: i32, %arg2: memref<2x4x256xf32, #tpu.memory_space<vmem>>, %arg3: memref<4x8xf32, #tpu.memory_space<vmem>>, %arg4: memref<1x8xf32, #tpu.memory_space<vmem>>, %arg5: memref<2x1xi32, #tpu.memory_space<vmem>>, %arg6: memref<2x4xf32, #tpu.memory_space<vmem>>) attributes {dimension_semantics = [#tpu.dimension_semantics<parallel>, #tpu.dimension_semantics<arbitrary>], iteration_bounds = array<i64: 1, 1>, scalar_prefetch = 0 : i64, scratch_operands = 1 : i64, tpu.core_type = #tpu.core_type<tc>, window_params = [{transform_indices = @transform_0, window_bounds = array<i64: 2, 4, 256>}, {pipeline_mode = #tpu.pipeline_mode<synchronous>, transform_indices = @transform_1, window_bounds = array<i64: 4, 8>}, {pipeline_mode = #tpu.pipeline_mode<synchronous>, transform_indices = @transform_2, window_bounds = array<i64: 1, 8>}, {transform_indices = @transform_3, window_bounds = array<i64: 2, 1>}]} {
    %c0_i32 = arith.constant 0 : i32
    %0 = arith.cmpi eq, %arg1, %c0_i32 : i32
    %1 = arith.extui %0 : i1 to i32
    %c0_i32_0 = arith.constant 0 : i32
    %2 = arith.cmpi ne, %1, %c0_i32_0 : i32
    scf.if %2 {
      %cst_9 = arith.constant 0.000000e+00 : f32
      %11 = vector.broadcast %cst_9 : f32 to vector<2x4xf32>
      %c0_10 = arith.constant 0 : index
      %c0_11 = arith.constant 0 : index
      %12 = vector.load %arg6[%c0_10, %c0_11] : memref<2x4xf32, #tpu.memory_space<vmem>>, vector<2x4xf32>
      tpu.vector_store %arg6[%c0_10, %c0_11], %11 {strides = array<i32>} : memref<2x4xf32, #tpu.memory_space<vmem>>, vector<2x4xf32>,
    } else {
    }
    %c0 = arith.constant 0 : index
    %c0_1 = arith.constant 0 : index
    %c0_2 = arith.constant 0 : index
    %3 = vector.load %arg2[%c0, %c0_1, %c0_2] : memref<2x4x256xf32, #tpu.memory_space<vmem>>, vector<2x4x256xf32>
    %c0_3 = arith.constant 0 : index
    %c0_4 = arith.constant 0 : index
    %4 = vector.load %arg6[%c0_3, %c0_4] : memref<2x4xf32, #tpu.memory_space<vmem>>, vector<2x4xf32>
    %cst = arith.constant dense<0.000000e+00> : vector<2x4xf32>
    %5 = vector.multi_reduction <add>, %3, %cst [2] : vector<2x4x256xf32> to vector<2x4xf32>
    %6 = arith.addf %4, %5 : vector<2x4xf32>
    %c0_5 = arith.constant 0 : index
    %c0_6 = arith.constant 0 : index
    %7 = vector.load %arg6[%c0_5, %c0_6] : memref<2x4xf32, #tpu.memory_space<vmem>>, vector<2x4xf32>
    tpu.vector_store %arg6[%c0_5, %c0_6], %6 {strides = array<i32>} : memref<2x4xf32, #tpu.memory_space<vmem>>, vector<2x4xf32>,
    %c0_i32_7 = arith.constant 0 : i32
    %8 = arith.cmpi eq, %arg1, %c0_i32_7 : i32
    %9 = arith.extui %8 : i1 to i32
    %c0_i32_8 = arith.constant 0 : i32
    %10 = arith.cmpi ne, %9, %c0_i32_8 : i32
    scf.if %10 {
      %c0_9 = arith.constant 0 : index
      %c0_10 = arith.constant 0 : index
      %11 = vector.load %arg6[%c0_9, %c0_10] : memref<2x4xf32, #tpu.memory_space<vmem>>, vector<2x4xf32>
      %c0_11 = arith.constant 0 : index
      %c0_12 = arith.constant 0 : index
      %12 = vector.load %arg4[%c0_11, %c0_12] : memref<1x8xf32, #tpu.memory_space<vmem>>, vector<1x8xf32>
      %13 = vector.shape_cast %12 : vector<1x8xf32> to vector<1x8xf32>
      %14 = vector.broadcast %13 : vector<1x8xf32> to vector<2x8xf32>
      %15 = vector.extract_strided_slice %11 {offsets = [0, 0], sizes = [2, 1], strides = [1, 1]} : vector<2x4xf32> to vector<2x1xf32>
      %c0_13 = arith.constant 0 : index
      %c0_14 = arith.constant 0 : index
      %16 = vector.load %arg3[%c0_13, %c0_14] : memref<4x8xf32, #tpu.memory_space<vmem>>, vector<1x8xf32>
      %17 = vector.broadcast %15 : vector<2x1xf32> to vector<2x8xf32>
      %18 = vector.broadcast %16 : vector<1x8xf32> to vector<2x8xf32>
      %19 = arith.mulf %17, %18 : vector<2x8xf32>
      %20 = arith.addf %14, %19 : vector<2x8xf32>
      %21 = vector.extract_strided_slice %11 {offsets = [0, 1], sizes = [2, 1], strides = [1, 1]} : vector<2x4xf32> to vector<2x1xf32>
      %c1 = arith.constant 1 : index
      %c0_15 = arith.constant 0 : index
      %22 = vector.load %arg3[%c1, %c0_15] : memref<4x8xf32, #tpu.memory_space<vmem>>, vector<1x8xf32>
      %23 = vector.broadcast %21 : vector<2x1xf32> to vector<2x8xf32>
      %24 = vector.broadcast %22 : vector<1x8xf32> to vector<2x8xf32>
      %25 = arith.mulf %23, %24 : vector<2x8xf32>
      %26 = arith.addf %20, %25 : vector<2x8xf32>
      %27 = vector.extract_strided_slice %11 {offsets = [0, 2], sizes = [2, 1], strides = [1, 1]} : vector<2x4xf32> to vector<2x1xf32>
      %c2 = arith.constant 2 : index
      %c0_16 = arith.constant 0 : index
      %28 = vector.load %arg3[%c2, %c0_16] : memref<4x8xf32, #tpu.memory_space<vmem>>, vector<1x8xf32>
      %29 = vector.broadcast %27 : vector<2x1xf32> to vector<2x8xf32>
      %30 = vector.broadcast %28 : vector<1x8xf32> to vector<2x8xf32>
      %31 = arith.mulf %29, %30 : vector<2x8xf32>
      %32 = arith.addf %26, %31 : vector<2x8xf32>
      %33 = vector.extract_strided_slice %11 {offsets = [0, 3], sizes = [2, 1], strides = [1, 1]} : vector<2x4xf32> to vector<2x1xf32>
      %c3 = arith.constant 3 : index
      %c0_17 = arith.constant 0 : index
      %34 = vector.load %arg3[%c3, %c0_17] : memref<4x8xf32, #tpu.memory_space<vmem>>, vector<1x8xf32>
      %35 = vector.broadcast %33 : vector<2x1xf32> to vector<2x8xf32>
      %36 = vector.broadcast %34 : vector<1x8xf32> to vector<2x8xf32>
      %37 = arith.mulf %35, %36 : vector<2x8xf32>
      %38 = arith.addf %32, %37 : vector<2x8xf32>
      %39 = vector.extract_strided_slice %38 {offsets = [0, 0], sizes = [2, 3], strides = [1, 1]} : vector<2x8xf32> to vector<2x3xf32>
      %cst_18 = arith.constant dense<0xFF800000> : vector<2xf32>
      %40 = vector.multi_reduction <maximumf>, %39, %cst_18 [1] : vector<2x3xf32> to vector<2xf32>
      %41 = vector.shape_cast %40 : vector<2xf32> to vector<2x1xf32>
      %42 = tpu.iota {dimensions = array<i32: 1>} : vector<2x3xi32>
      %43 = vector.broadcast %41 : vector<2x1xf32> to vector<2x3xf32>
      %44 = arith.cmpf oge, %39, %43 : vector<2x3xf32>
      %c3_i32 = arith.constant 3 : i32
      %45 = vector.broadcast %c3_i32 : i32 to vector<2x3xi32>
      %46 = arith.select %44, %42, %45 : vector<2x3xi1>, vector<2x3xi32>
      %cst_19 = arith.constant dense<2147483647> : vector<2xi32>
      %47 = vector.multi_reduction <minsi>, %46, %cst_19 [1] : vector<2x3xi32> to vector<2xi32>
      %48 = vector.shape_cast %47 : vector<2xi32> to vector<2x1xi32>
      %49 = vector.extract_strided_slice %38 {offsets = [0, 3], sizes = [2, 2], strides = [1, 1]} : vector<2x8xf32> to vector<2x2xf32>
      %cst_20 = arith.constant dense<0xFF800000> : vector<2xf32>
      %50 = vector.multi_reduction <maximumf>, %49, %cst_20 [1] : vector<2x2xf32> to vector<2xf32>
      %51 = vector.shape_cast %50 : vector<2xf32> to vector<2x1xf32>
      %52 = tpu.iota {dimensions = array<i32: 1>} : vector<2x2xi32>
      %53 = vector.broadcast %51 : vector<2x1xf32> to vector<2x2xf32>
      %54 = arith.cmpf oge, %49, %53 : vector<2x2xf32>
      %c2_i32 = arith.constant 2 : i32
      %55 = vector.broadcast %c2_i32 : i32 to vector<2x2xi32>
      %56 = arith.select %54, %52, %55 : vector<2x2xi1>, vector<2x2xi32>
      %cst_21 = arith.constant dense<2147483647> : vector<2xi32>
      %57 = vector.multi_reduction <minsi>, %56, %cst_21 [1] : vector<2x2xi32> to vector<2xi32>
      %58 = vector.shape_cast %57 : vector<2xi32> to vector<2x1xi32>
      %59 = vector.extract_strided_slice %38 {offsets = [0, 5], sizes = [2, 3], strides = [1, 1]} : vector<2x8xf32> to vector<2x3xf32>
      %cst_22 = arith.constant dense<0xFF800000> : vector<2xf32>
      %60 = vector.multi_reduction <maximumf>, %59, %cst_22 [1] : vector<2x3xf32> to vector<2xf32>
      %61 = vector.shape_cast %60 : vector<2xf32> to vector<2x1xf32>
      %62 = tpu.iota {dimensions = array<i32: 1>} : vector<2x3xi32>
      %63 = vector.broadcast %61 : vector<2x1xf32> to vector<2x3xf32>
      %64 = arith.cmpf oge, %59, %63 : vector<2x3xf32>
      %c3_i32_23 = arith.constant 3 : i32
      %65 = vector.broadcast %c3_i32_23 : i32 to vector<2x3xi32>
      %66 = arith.select %64, %62, %65 : vector<2x3xi1>, vector<2x3xi32>
      %cst_24 = arith.constant dense<2147483647> : vector<2xi32>
      %67 = vector.multi_reduction <minsi>, %66, %cst_24 [1] : vector<2x3xi32> to vector<2xi32>
      %68 = vector.shape_cast %67 : vector<2xi32> to vector<2x1xi32>
      %c3_i32_25 = arith.constant 3 : i32
      %69 = vector.broadcast %c3_i32_25 : i32 to vector<2x1xi32>
      %70 = arith.muli %58, %69 : vector<2x1xi32>
      %71 = arith.addi %48, %70 : vector<2x1xi32>
      %c6_i32 = arith.constant 6 : i32
      %72 = vector.broadcast %c6_i32 : i32 to vector<2x1xi32>
      %73 = arith.muli %68, %72 : vector<2x1xi32>
      %74 = arith.addi %71, %73 : vector<2x1xi32>
      %c0_26 = arith.constant 0 : index
      %c0_27 = arith.constant 0 : index
      %75 = vector.load %arg5[%c0_26, %c0_27] : memref<2x1xi32, #tpu.memory_space<vmem>>, vector<2x1xi32>
      tpu.vector_store %arg5[%c0_26, %c0_27], %74 {strides = array<i32>} : memref<2x1xi32, #tpu.memory_space<vmem>>, vector<2x1xi32>,
    } else {
    }
    return
  }
  func.func @transform_0(%arg0: i32, %arg1: i32) -> (i32, i32, i32) {
    %c0_i32 = arith.constant 0 : i32
    %c0_i32_0 = arith.constant 0 : i32
    return %arg0, %c0_i32, %arg1 : i32, i32, i32
  }
  func.func @transform_1(%arg0: i32, %arg1: i32) -> (i32, i32) {
    %c0_i32 = arith.constant 0 : i32
    %c0_i32_0 = arith.constant 0 : i32
    %c0_i32_1 = arith.constant 0 : i32
    return %c0_i32, %c0_i32_0 : i32, i32
  }
  func.func @transform_2(%arg0: i32, %arg1: i32) -> (i32, i32) {
    %c0_i32 = arith.constant 0 : i32
    %c0_i32_0 = arith.constant 0 : i32
    %c0_i32_1 = arith.constant 0 : i32
    return %c0_i32, %c0_i32_0 : i32, i32
  }
  func.func @transform_3(%arg0: i32, %arg1: i32) -> (i32, i32) {
    %c0_i32 = arith.constant 0 : i32
    %c0_i32_0 = arith.constant 0 : i32
    return %arg0, %c0_i32 : i32, i32
  }
}

</mosaic_0001>

<bundles_post_ra>
// kernel: tpu_custom_call.1
= control target key start
LH: loop header
LB: loop body
LE: loop exit
PB: predicated region body
PF: predicated region fallthrough
CT: control target
= control target key end

     0   :  { %8 = vsyncpa [#allocation4], 0  ;;  %s357_s0 = inlined_call_operand.hbm [shape: f32[2,4,256], index: 0, kind: input, shape index: {}]   ;;  %s358_s1 = inlined_call_operand.hbm [shape: f32[4,8], index: 1, kind: input, shape index: {}]   ;;  %s359_s2 = inlined_call_operand.vmem [shape: f32[1,8], index: 2, kind: input, shape index: {}]   ;;  %s360_s3 = inlined_call_operand.vmem [shape: s32[2,1], index: 3, kind: output, shape index: {}]  }
   0x1   :  { %9 = vsyncpa [#allocation6], 0  ;;  %s290_s12 = smov [#allocation3]   ;;  %s242_s16 = scalar_lea.hbm %s357_s0, 256 }
   0x2   :  { %s15_s13 = sshll.u32 %s290_s12, 4  ;;  %p243_p0 = scmp.ne.s32.totalorder %s357_s0, %s242_s16  ;;  %s16_s13 = int_to_ptr.vmem [resolvable:$true] %s15_s13 }
   0x3   :  { %p246_p1 = scmp.lt.u32.totalorder %s242_s16, %s357_s0 }
   0x5   :  { %p248_p2 = pnand %p246_p1, %p243_p0 }
   0x7   :  { %251 = shalt.err (!%p248_p2)
}
   0x8   :  { %s252_s21 = scalar_lea.vmem %s16_s13, 256  ;;  %p257_p4 = scmp.lt.s32.totalorder %s16_s13, %s16_s13 }
   0x9   :  { %p253_p3 = scmp.ne.s32.totalorder %s16_s13, %s252_s21  ;;  %p258_p5 = scmp.lt.s32.totalorder %s252_s21, %s252_s21 }
   0xb   :  { %p259_p6 = por %p258_p5, %p257_p4 }
   0xd   :  { %p260_p7 = pnand %p259_p6, %p253_p3 }
   0xf   :  { %263 = shalt.err (!%p260_p7)
}
  0x10   :  { %s291_s22 = smov 128   ;;  %s292_s23 = smov 8  }
  0x11   :  { %21 = dma.hbm_to_vmem [thread:$0]  %s357_s0, 256, %s16_s13, [#allocation4], %s291_s22, %s291_s22, %s292_s23  }
  0x12   :  { %s293_s26 = smov [#allocation5]   ;;  %s264_s30 = scalar_lea.hbm %s358_s1, 64 }
  0x13   :  { %s28_s27 = sshll.u32 %s293_s26, 4  ;;  %p265_p8 = scmp.ne.s32.totalorder %s358_s1, %s264_s30  ;;  %s29_s27 = int_to_ptr.vmem [resolvable:$true] %s28_s27 }
  0x14   :  { %p268_p9 = scmp.lt.u32.totalorder %s264_s30, %s358_s1 }
  0x16   :  { %p270_p10 = pnand %p268_p9, %p265_p8 }
  0x18   :  { %273 = shalt.err (!%p270_p10)
}
  0x19   :  { %s274_s8 = scalar_lea.vmem %s29_s27, 64  ;;  %p279_p12 = scmp.lt.s32.totalorder %s29_s27, %s29_s27 }
  0x1a   :  { %p275_p11 = scmp.ne.s32.totalorder %s29_s27, %s274_s8  ;;  %p280_p13 = scmp.lt.s32.totalorder %s274_s8, %s274_s8 }
  0x1c   :  { %p281_p0 = por %p280_p13, %p279_p12 }
  0x1e   :  { %p282_p1 = pnand %p281_p0, %p275_p11 }
  0x20   :  { %285 = shalt.err (!%p282_p1)
}
  0x21   :  { %31 = dma.hbm_to_vmem [thread:$0]  %s358_s1, 64, %s29_s27, [#allocation6]  }
  0x22   :  { %286 = dma.done.wait [#allocation4], 256  }
  0x23   :  { %287 = vsyncadd [#allocation4], 4294967040 }
  0x24   :  { %288 = dma.done.wait [#allocation6], 64  }
  0x25   :  { %289 = vsyncadd [#allocation6], 4294967232  ;;  %vm55_vm0 = vcmask 1043456   ;;  %v46_v0 = vld [vmem:[#allocation3] sm:$0xff]  ;;  %v47_v1 = vld [vmem:[#allocation3 + $0x8] sm:$0xff]  ;;  %vm44_vm1 = vcmask 25600   ;;  %v68_v13 = vlaneseq }
  0x26   :  { %v51_v2 = vcombine.high %v46_v0, %v46_v0  ;;  %v56_v3 = vsel %vm55_vm0, %v46_v0, 0.0  ;;  %v52_v4 = vcombine.high %v47_v1, %v47_v1  ;;  %v61_v6 = vsel %vm55_vm0, %v47_v1, 0.0  ;;  %v220_v27 = vld [vmem:[#allocation5] ss:$0 sm:$0xff]  ;;  %v219_v30 = vld [vmem:[%s359_s2] ss:$0 sm:$0xff] }
  0x27   :  { %v294_v10 = vmov 0.0   ;;  %v295_v11 = vmov 2   ;;  %v296_v12 = vmov 0   ;;  %v69_v14 = vand.u32 127, %v68_v13  ;;  %v221_v31 = vld [vmem:[#allocation5 + $0x1] ss:$0 sm:$0xff] }
  0x28   :  { %v57_v5 = vsel %vm55_vm0, %v51_v2, 0.0  ;;  %v62_v7 = vsel %vm55_vm0, %v52_v4, 0.0  ;;  %45 = vst.msk [vmem:[#allocation2] sm:$0x3] %vm44_vm1, %v294_v10  ;;  %237 = vset.pattern.permute.xlu0 %v295_v11  ;;  %235 = vset.pattern.permute.xlu1 %v296_v12  ;;  %v71_v15 = vshrl.u32 %v68_v13, 7  ;;  %vm78_vm2 = vcmask 1041409  }
  0x29   :  { %v58_v8 = vadd.f32 %v57_v5, %v56_v3  ;;  %v63_v9 = vadd.f32 %v62_v7, %v61_v6  ;;  %v297_v25 = vmov 1   ;;  %v298_v26 = vmov 3   ;;  %v222_v32 = vld [vmem:[#allocation5 + $0x2] ss:$0 sm:$0xff]  ;;  %v223_v39 = vld [vmem:[#allocation5 + $0x3] ss:$0 sm:$0xff] }
  0x2a   :  { %v72_v17 = vsub.s32 %v69_v14, %v71_v15  ;;  %vm184_vm3 = vcmask 58408   ;;  %vm161_vm4 = vcmask 33816   ;;  %vm140_vm5 = vcmask 17408   ;;  %s299_s2 = smov 3   ;;  %s300_s11 = smov 5  }
  0x2b   :  { %59 = vadd.xlane.f32.xlu0 %v58_v8  ;;  %vm211_vm12 = vcmask 1024  }
  0x2f   :  { %64 = vadd.xlane.f32.xlu0 %v63_v9  ;;  %v48_v20 = vld [vmem:[#allocation2] sm:$0x3] }
  0xb8   :  { %v60_v16 = vpop.xlane.xlu0 %59 }
  0xb9   :  { %v73_v19 = vrot.slane %v60_v16, %v72_v17 }
  0xbc   :  { %v65_v18 = vpop.xlane.xlu0 %64 }
  0xbd   :  { %v77_v21 = vrot.slane %v65_v18, %v72_v17 }
  0xbf   :  { %v79_v22 = vsel %vm78_vm2, %v77_v21, %v73_v19 }
  0xc0   :  { %v81_v23 = vadd.f32 %v79_v22, %v48_v20 }
  0xc2   :  { %83 = vst.msk [vmem:[#allocation2] sm:$0x3] %vm44_vm1, %v81_v23 }
  0xc9   :  { %v87_v24 = vld [vmem:[#allocation2] sm:$0x3] }
  0xca   :  { %120 = vperm.xlu0 %237, %v87_v24   ;;  %98 = vperm.xlu1 %235, %v87_v24  }
  0xce   :  { %236 = vset.pattern.permute.xlu1 %v297_v25  ;;  %239 = vset.pattern.permute.xlu0 %v298_v26 }
  0xcf   :  { %109 = vperm.xlu1 %236, %v87_v24  }
  0xd3   :  { %238 = vset.pattern.permute.xlu1 %v298_v26 }
  0xd4   :  { %131 = vperm.xlu1 %238, %v87_v24  }
 0x149   :  { %v99_v28 = vpop.permute.xlu1 %98  ;;  %v121_v33 = vpop.permute.xlu0 %120 }
 0x14a   :  { %v105_v29 = vmul.f32 %v220_v27, %v99_v28  ;;  %v127_v37 = vmul.f32 %v222_v32, %v121_v33 }
 0x14c   :  { %v106_v35 = vadd.f32 %v219_v30, %v105_v29 }
 0x14e   :  { %v110_v34 = vpop.permute.xlu1 %109 }
 0x14f   :  { %v116_v36 = vmul.f32 %v221_v31, %v110_v34 }
 0x151   :  { %v117_v38 = vadd.f32 %v116_v36, %v106_v35 }
 0x153   :  { %v128_v40 = vadd.f32 %v127_v37, %v117_v38  ;;  %v132_v41 = vpop.permute.xlu1 %131 }
 0x154   :  { %v138_v42 = vmul.f32 %v223_v39, %v132_v41 }
 0x156   :  { %v139_v43 = vadd.f32 %v138_v42, %v128_v40 }
 0x158   :  { %v185_v44 = vsel %vm184_vm3, %v139_v43, -inf  ;;  %v162_v45 = vsel %vm161_vm4, %v139_v43, -inf  ;;  %v141_v46 = vsel %vm140_vm5, %v139_v43, -inf }
 0x159   :  { %186 = vmax.xlane.f32.xlu0 %v185_v44  ;;  %163 = vmax.xlane.f32.xlu1 %v162_v45 }
 0x15d   :  { %142 = vmax.xlane.f32.xlu1 %v141_v46 }
 0x16e   :  { %166 = vrot.lane.b32.xlu1 %v69_v14, %s299_s2 }
 0x172   :  { %189 = vrot.lane.b32.xlu1 %v69_v14, %s300_s11 }
 0x1e6   :  { %v164_v47 = vpop.xlane.xlu1 %163  ;;  %v187_v53 = vpop.xlane.xlu0 %186 }
 0x1e7   :  { %vm165_vm7 = vcmp.ge.f32.partialorder %v139_v43, %v164_v47  ;;  %vm188_vm8 = vcmp.ge.f32.partialorder %v139_v43, %v187_v53 }
 0x1ea   :  { %v143_v48 = vpop.xlane.xlu1 %142 }
 0x1eb   :  { %vm144_vm6 = vcmp.ge.f32.partialorder %v139_v43, %v143_v48 }
 0x1ec   :  { %v145_v49 = vsel %vm144_vm6, %v69_v14, 3 }
 0x1ed   :  { %v146_v50 = vsel %vm140_vm5, %v145_v49, 2147483647 }
 0x1ee   :  { %v167_v51 = vpop.permute.xlu1 %166  ;;  %v148_v52 = vshra.s32 %v146_v50, 16  ;;  %v147_v4 = vand.u32 65535, %v146_v50 }
 0x1ef   :  { %v168_v54 = vsel %vm165_vm7, %v167_v51, 2 }
 0x1f0   :  { %v169_v55 = vsel %vm161_vm4, %v168_v54, 2147483647  ;;  %v150_v56 = vcvt.s32.f32 %v148_v52  ;;  %v149_v8 = vcvt.s32.f32 %v147_v4 }
 0x1f1   :  { %v171_v57 = vshra.s32 %v169_v55, 16  ;;  %v170_v0 = vand.u32 65535, %v169_v55 }
 0x1f2   :  { %151 = vmin.xlane.f32.xlu0 %v150_v56  ;;  %v190_v58 = vpop.permute.xlu1 %189 }
 0x1f3   :  { %v191_v59 = vsel %vm188_vm8, %v190_v58, 3  ;;  %v173_v60 = vcvt.s32.f32 %v171_v57  ;;  %v172_v3 = vcvt.s32.f32 %v170_v0 }
 0x1f4   :  { %v192_v61 = vsel %vm184_vm3, %v191_v59, 2147483647 }
 0x1f5   :  { %174 = vmin.xlane.f32.xlu1 %v173_v60  ;;  %v194_v62 = vshra.s32 %v192_v61, 16  ;;  %v193_v6 = vand.u32 65535, %v192_v61 }
 0x1f7   :  { %v196_v63 = vcvt.s32.f32 %v194_v62  ;;  %v195_v10 = vcvt.s32.f32 %v193_v6 }
 0x1f9   :  { %197 = vmin.xlane.f32.xlu0 %v196_v63 }
 0x27f   :  { %v152_v1 = vpop.xlane.xlu0 %151 }
 0x280   :  { %vm153_vm10 = vcmp.eq.f32.partialorder %v150_v56, %v152_v1  ;;  %v158_v14 = vcvt.f32.s32 %v152_v1 }
 0x281   :  { %v154_v9 = vsel %vm153_vm10, %v149_v8, inf }
 0x282   :  { %v175_v2 = vpop.xlane.xlu1 %174  ;;  %v159_v19 = vshll.u32 %v158_v14, 16 }
 0x283   :  { %vm176_vm9 = vcmp.eq.f32.partialorder %v173_v60, %v175_v2  ;;  %v181_v12 = vcvt.f32.s32 %v175_v2 }
 0x284   :  { %v177_v5 = vsel %vm176_vm9, %v172_v3, inf }
 0x285   :  { %178 = vmin.xlane.f32.xlu0 %v177_v5  ;;  %v182_v15 = vshll.u32 %v181_v12, 16 }
 0x286   :  { %v198_v7 = vpop.xlane.xlu0 %197 }
 0x287   :  { %vm199_vm11 = vcmp.eq.f32.partialorder %v196_v63, %v198_v7  ;;  %v204_v20 = vcvt.f32.s32 %v198_v7 }
 0x288   :  { %v200_v11 = vsel %vm199_vm11, %v195_v10, inf }
 0x289   :  { %155 = vmin.xlane.f32.xlu0 %v154_v9  ;;  %v205_v25 = vshll.u32 %v204_v20, 16 }
 0x28d   :  { %201 = vmin.xlane.f32.xlu0 %v200_v11 }
 0x312   :  { %v179_v13 = vpop.xlane.xlu0 %178 }
 0x313   :  { %v180_v16 = vcvt.f32.s32 %v179_v13 }
 0x315   :  { %v183_v17 = vadd.s32 %v182_v15, %v180_v16 }
 0x316   :  { %v156_v18 = vpop.xlane.xlu0 %155 }
 0x317   :  { %v157_v21 = vcvt.f32.s32 %v156_v18  ;;  %v207_v22 = vmul.u32 3, %v183_v17 }
 0x319   :  { %v160_v23 = vadd.s32 %v159_v19, %v157_v21 }
 0x31a   :  { %v202_v24 = vpop.xlane.xlu0 %201 }
 0x31b   :  { %v208_v26 = vadd.s32 %v207_v22, %v160_v23  ;;  %v203_v27 = vcvt.f32.s32 %v202_v24 }
 0x31d   :  { %v206_v28 = vadd.s32 %v205_v25, %v203_v27 }
 0x31f   :  { %v209_v29 = vmul.u32 6, %v206_v28 }
 0x321   :  { %v210_v30 = vadd.s32 %v209_v29, %v208_v26 }
 0x323   :  { %212 = vst.msk [vmem:[%s360_s3] sm:$0x3] %vm211_vm12, %v210_v30 }
 0x324   :  { %217 = vsyncpa [#allocation4], 1 }
 0x325   :  { %218 = vsyncpa [#allocation6], 1 }

</bundles_post_ra>
